<compile_context>
chip_gen: v5e
topology: v5e:2x2
jax: 0.10.0
libtpu: 0.0.40
codegen_flags: <defaults>
</compile_context>

<pallas_src>
import jax
import jax.numpy as jnp
from jax.experimental import pallas as pl
from jax.experimental.pallas import tpu as pltpu

MASK_EPS = 1e-8        # epsilon the PyTorch module adds on the masked path
LANES = 128
MAX_BLOCK_ROWS = 512


def _round_up(a, b):
    return -(-a // b) * b


def _resize_bilinear_align_corners(x, out_h, out_w):
    """NCHW bilinear resize with align_corners=True (== F.interpolate)."""
    # TODO(synk): interpolation is plain-JAX glue outside the Pallas kernel;
    # only the hot, memory-bound reduction is done in Pallas.
    b, c, h, w = x.shape
    if (h, w) == (out_h, out_w):
        return x.astype(jnp.float32)

    def axis_weights(in_size, out_size):
        if out_size == 1 or in_size == 1:
            src = jnp.zeros((out_size,), jnp.float32)
        else:
            src = jnp.arange(out_size, dtype=jnp.float32) * (
                (in_size - 1) / (out_size - 1))
        lo = jnp.clip(jnp.floor(src).astype(jnp.int32), 0, in_size - 1)
        hi = jnp.clip(lo + 1, 0, in_size - 1)
        frac = src - lo.astype(jnp.float32)
        w_mat = jnp.zeros((out_size, in_size), jnp.float32)
        w_mat = w_mat.at[jnp.arange(out_size), lo].add(1.0 - frac)
        w_mat = w_mat.at[jnp.arange(out_size), hi].add(frac)
        return w_mat

    wh = axis_weights(h, out_h)           # (out_h, h)
    ww = axis_weights(w, out_w)           # (out_w, w)
    y = jnp.einsum('oh,bchw->bcow', wh, x.astype(jnp.float32))
    y = jnp.einsum('pw,bcow->bcop', ww, y)
    return y


def _make_silog_reduce_kernel(add_eps):
    eps = MASK_EPS if add_eps else 0.0

    def kernel(x_ref, t_ref, m_ref, out_ref):
        step = pl.program_id(0)

        @pl.when(step == 0)
        def _():
            out_ref[...] = jnp.zeros_like(out_ref)

        x = x_ref[...]
        t = t_ref[...]
        m = m_ref[...]
        if eps:
            x = x + eps
            t = t + eps

        g = jnp.log(x) - jnp.log(t)            # EUP transcendentals
        g = jnp.where(m > 0.0, g, 0.0)         # padded / masked-out -> 0

        cnt = jnp.sum(m)                       # number of valid elements
        s1 = jnp.sum(g)                        # sum g
        s2 = jnp.sum(g * g)                    # sum g^2

        # Pack the three partial sums into lanes 0..2 of a lane-dense row and
        # accumulate into the grid-resident output block (single HBM writeback).
        lane = jax.lax.broadcasted_iota(jnp.int32, out_ref.shape, 1)
        packed = (jnp.where(lane == 0, cnt, 0.0)
                  + jnp.where(lane == 1, s1, 0.0)
                  + jnp.where(lane == 2, s2, 0.0))
        out_ref[...] += packed

    return kernel


def silog_loss(pred, target, mask=None, interpolate=True):
    """Pallas implementation of SILogLoss.forward."""
    pred = pred.astype(jnp.float32)
    target = target.astype(jnp.float32)
    if interpolate:
        pred = _resize_bilinear_align_corners(
            pred, target.shape[-2], target.shape[-1])

    if mask is not None:
        assert mask.shape == target.shape, "mask must match target shape"
        weights = mask.astype(jnp.float32)
        add_eps = True
    else:
        weights = jnp.ones(target.shape, jnp.float32)
        add_eps = False

    n_elems = 1
    for d in target.shape:
        n_elems *= int(d)

    rows = _round_up(pl.cdiv(n_elems, LANES), 8)
    blk_rows = min(MAX_BLOCK_ROWS, rows)
    rows_padded = _round_up(rows, blk_rows)
    total = rows_padded * LANES

    def flat_pad(a, fill):
        a = a.reshape(-1)
        return jnp.pad(a, (0, total - n_elems),
                       constant_values=fill).reshape(rows_padded, LANES)

    x2 = flat_pad(pred, 1.0)        # log(1) = 0 keeps padding benign
    t2 = flat_pad(target, 1.0)
    m2 = flat_pad(weights, 0.0)     # padded elements carry zero weight

    block_spec = pl.BlockSpec((blk_rows, LANES), lambda i: (i, 0))

    partial = pl.pallas_call(
        _make_silog_reduce_kernel(add_eps),
        out_shape=jax.ShapeDtypeStruct((1, LANES), jnp.float32),
        grid_spec=pltpu.PrefetchScalarGridSpec(
            num_scalar_prefetch=0,
            grid=(rows_padded // blk_rows,),
            in_specs=[block_spec, block_spec, block_spec],
            out_specs=pl.BlockSpec((1, LANES), lambda i: (0, 0)),
        ),
        compiler_params=pltpu.CompilerParams(
            dimension_semantics=("arbitrary",),   # grid-resident accumulator
            vmem_limit_bytes=32 * 1024 * 1024,
        ),
    )(x2, t2, m2)

    n = partial[0, 0]
    s1 = partial[0, 1]
    s2 = partial[0, 2]
    mean = s1 / n
    var = (s2 - n * mean * mean) / (n - 1.0)   # unbiased == torch.var default
    dg = var + 0.15 * mean * mean
    return jnp.sqrt(dg)


def reference_silog_loss(pred, target, mask=None, interpolate=True):
    """Pure-JAX mirror of the PyTorch forward (for checking, eager only)."""
    pred = pred.astype(jnp.float32)
    target = target.astype(jnp.float32)
    if interpolate:
        pred = _resize_bilinear_align_corners(
            pred, target.shape[-2], target.shape[-1])
    if mask is not None:
        pred = pred[mask] + MASK_EPS
        target = target[mask] + MASK_EPS
    g = jnp.log(pred) - jnp.log(target)
    dg = jnp.var(g, ddof=1) + 0.15 * jnp.mean(g) ** 2
    return jnp.sqrt(dg)


if __name__ == "__main__":
    B, C = 2, 1
    H_in, W_in = 8, 8          # pre-interpolation prediction resolution
    H_out, W_out = 16, 16      # target resolution

    key = jax.random.PRNGKey(0)
    k1, k2, k3 = jax.random.split(key, 3)
    pred = jax.random.uniform(k1, (B, C, H_in, W_in), jnp.float32, 0.5, 9.5)
    target = jax.random.uniform(k2, (B, C, H_out, W_out), jnp.float32, 0.5, 9.5)
    mask = jax.random.uniform(k3, (B, C, H_out, W_out), jnp.float32) > 0.3

    # Unmasked path (interpolate=True exercises the bilinear resize).
    loss = jax.block_until_ready(silog_loss(pred, target))
    ref = reference_silog_loss(pred, target)
    assert jnp.allclose(loss, ref, rtol=1e-3, atol=1e-4), (float(loss), float(ref))

    # Masked path.
    loss_m = jax.block_until_ready(silog_loss(pred, target, mask=mask))
    ref_m = reference_silog_loss(pred, target, mask=mask)
    assert jnp.allclose(loss_m, ref_m, rtol=1e-3, atol=1e-4), (float(loss_m), float(ref_m))

    print("KERNEL_OK")
</pallas_src>

<mosaic_0001>
module attributes {stable_mosaic.version = 11 : i64} {
  func.func @kernel(%arg0: i32, %arg1: memref<8x128xf32, #tpu.memory_space<vmem>>, %arg2: memref<8x128xf32, #tpu.memory_space<vmem>>, %arg3: memref<8x128xf32, #tpu.memory_space<vmem>>, %arg4: memref<1x128xf32, #tpu.memory_space<vmem>>) attributes {dimension_semantics = [#tpu.dimension_semantics<arbitrary>], iteration_bounds = array<i64: 1>, scalar_prefetch = 0 : i64, scratch_operands = 0 : i64, tpu.core_type = #tpu.core_type<tc>, window_params = [{transform_indices = @transform_0, window_bounds = array<i64: 8, 128>}, {transform_indices = @transform_1, window_bounds = array<i64: 8, 128>}, {transform_indices = @transform_2, window_bounds = array<i64: 8, 128>}, {pipeline_mode = #tpu.pipeline_mode<synchronous>, transform_indices = @transform_3, window_bounds = array<i64: 1, 128>}]} {
    %c0_i32 = arith.constant 0 : i32
    %0 = arith.cmpi eq, %arg0, %c0_i32 : i32
    %1 = arith.extui %0 : i1 to i32
    %c0_i32_0 = arith.constant 0 : i32
    %2 = arith.cmpi ne, %1, %c0_i32_0 : i32
    scf.if %2 {
      %cst_18 = arith.constant 0.000000e+00 : f32
      %47 = vector.broadcast %cst_18 : f32 to vector<1x128xf32>
      %c0_19 = arith.constant 0 : index
      %c0_20 = arith.constant 0 : index
      %48 = vector.load %arg4[%c0_19, %c0_20] : memref<1x128xf32, #tpu.memory_space<vmem>>, vector<1x128xf32>
      tpu.vector_store %arg4[%c0_19, %c0_20], %47 {strides = array<i32>} : memref<1x128xf32, #tpu.memory_space<vmem>>, vector<1x128xf32>,
    } else {
    }
    %c0 = arith.constant 0 : index
    %c0_1 = arith.constant 0 : index
    %3 = vector.load %arg1[%c0, %c0_1] : memref<8x128xf32, #tpu.memory_space<vmem>>, vector<8x128xf32>
    %c0_2 = arith.constant 0 : index
    %c0_3 = arith.constant 0 : index
    %4 = vector.load %arg2[%c0_2, %c0_3] : memref<8x128xf32, #tpu.memory_space<vmem>>, vector<8x128xf32>
    %c0_4 = arith.constant 0 : index
    %c0_5 = arith.constant 0 : index
    %5 = vector.load %arg3[%c0_4, %c0_5] : memref<8x128xf32, #tpu.memory_space<vmem>>, vector<8x128xf32>
    %6 = math.log %3 : vector<8x128xf32>
    %7 = math.log %4 : vector<8x128xf32>
    %8 = arith.subf %6, %7 : vector<8x128xf32>
    %cst = arith.constant 0.000000e+00 : f32
    %9 = vector.broadcast %cst : f32 to vector<8x128xf32>
    %10 = arith.cmpf ogt, %5, %9 : vector<8x128xf32>
    %cst_6 = arith.constant 0.000000e+00 : f32
    %11 = vector.broadcast %cst_6 : f32 to vector<8x128xf32>
    %12 = arith.select %10, %8, %11 : vector<8x128xi1>, vector<8x128xf32>
    %13 = vector.shape_cast %5 : vector<8x128xf32> to vector<1x8x128xf32>
    %cst_7 = arith.constant dense<0.000000e+00> : vector<1xf32>
    %14 = vector.multi_reduction <add>, %13, %cst_7 [1, 2] : vector<1x8x128xf32> to vector<1xf32>
    %15 = vector.shape_cast %14 : vector<1xf32> to vector<1x1x1xf32>
    %16 = vector.extract %15[0, 0, 0] : f32 from vector<1x1x1xf32>
    %17 = vector.shape_cast %12 : vector<8x128xf32> to vector<1x8x128xf32>
    %cst_8 = arith.constant dense<0.000000e+00> : vector<1xf32>
    %18 = vector.multi_reduction <add>, %17, %cst_8 [1, 2] : vector<1x8x128xf32> to vector<1xf32>
    %19 = vector.shape_cast %18 : vector<1xf32> to vector<1x1x1xf32>
    %20 = vector.extract %19[0, 0, 0] : f32 from vector<1x1x1xf32>
    %21 = arith.mulf %12, %12 : vector<8x128xf32>
    %22 = vector.shape_cast %21 : vector<8x128xf32> to vector<1x8x128xf32>
    %cst_9 = arith.constant dense<0.000000e+00> : vector<1xf32>
    %23 = vector.multi_reduction <add>, %22, %cst_9 [1, 2] : vector<1x8x128xf32> to vector<1xf32>
    %24 = vector.shape_cast %23 : vector<1xf32> to vector<1x1x1xf32>
    %25 = vector.extract %24[0, 0, 0] : f32 from vector<1x1x1xf32>
    %26 = tpu.iota {dimensions = array<i32: 1>} : vector<1x128xi32>
    %c0_i32_10 = arith.constant 0 : i32
    %27 = vector.broadcast %c0_i32_10 : i32 to vector<1x128xi32>
    %28 = arith.cmpi eq, %26, %27 : vector<1x128xi32>
    %cst_11 = arith.constant 0.000000e+00 : f32
    %29 = vector.broadcast %16 : f32 to vector<1x128xf32>
    %30 = vector.broadcast %cst_11 : f32 to vector<1x128xf32>
    %31 = arith.select %28, %29, %30 : vector<1x128xi1>, vector<1x128xf32>
    %c1_i32 = arith.constant 1 : i32
    %32 = vector.broadcast %c1_i32 : i32 to vector<1x128xi32>
    %33 = arith.cmpi eq, %26, %32 : vector<1x128xi32>
    %cst_12 = arith.constant 0.000000e+00 : f32
    %34 = vector.broadcast %20 : f32 to vector<1x128xf32>
    %35 = vector.broadcast %cst_12 : f32 to vector<1x128xf32>
    %36 = arith.select %33, %34, %35 : vector<1x128xi1>, vector<1x128xf32>
    %37 = arith.addf %31, %36 : vector<1x128xf32>
    %c2_i32 = arith.constant 2 : i32
    %38 = vector.broadcast %c2_i32 : i32 to vector<1x128xi32>
    %39 = arith.cmpi eq, %26, %38 : vector<1x128xi32>
    %cst_13 = arith.constant 0.000000e+00 : f32
    %40 = vector.broadcast %25 : f32 to vector<1x128xf32>
    %41 = vector.broadcast %cst_13 : f32 to vector<1x128xf32>
    %42 = arith.select %39, %40, %41 : vector<1x128xi1>, vector<1x128xf32>
    %43 = arith.addf %37, %42 : vector<1x128xf32>
    %c0_14 = arith.constant 0 : index
    %c0_15 = arith.constant 0 : index
    %44 = vector.load %arg4[%c0_14, %c0_15] : memref<1x128xf32, #tpu.memory_space<vmem>>, vector<1x128xf32>
    %45 = arith.addf %44, %43 : vector<1x128xf32>
    %c0_16 = arith.constant 0 : index
    %c0_17 = arith.constant 0 : index
    %46 = vector.load %arg4[%c0_16, %c0_17] : memref<1x128xf32, #tpu.memory_space<vmem>>, vector<1x128xf32>
    tpu.vector_store %arg4[%c0_16, %c0_17], %45 {strides = array<i32>} : memref<1x128xf32, #tpu.memory_space<vmem>>, vector<1x128xf32>,
    return
  }
  func.func @transform_0(%arg0: i32) -> (i32, i32) {
    %c0_i32 = arith.constant 0 : i32
    %c0_i32_0 = arith.constant 0 : i32
    return %arg0, %c0_i32 : i32, i32
  }
  func.func @transform_1(%arg0: i32) -> (i32, i32) {
    %c0_i32 = arith.constant 0 : i32
    %c0_i32_0 = arith.constant 0 : i32
    return %arg0, %c0_i32 : i32, i32
  }
  func.func @transform_2(%arg0: i32) -> (i32, i32) {
    %c0_i32 = arith.constant 0 : i32
    %c0_i32_0 = arith.constant 0 : i32
    return %arg0, %c0_i32 : i32, i32
  }
  func.func @transform_3(%arg0: i32) -> (i32, i32) {
    %c0_i32 = arith.constant 0 : i32
    %c0_i32_0 = arith.constant 0 : i32
    %c0_i32_1 = arith.constant 0 : i32
    return %c0_i32, %c0_i32_0 : i32, i32
  }
}

</mosaic_0001>

<bundles_post_ra>
// kernel: tpu_custom_call.1
= control target key start
LH: loop header
LB: loop body
LE: loop exit
PB: predicated region body
PF: predicated region fallthrough
CT: control target
= control target key end

     0   :  { %8 = vsyncpa [#allocation3], 0  ;;  %s287_s0 = inlined_call_operand.hbm [shape: f32[8,128], index: 0, kind: input, shape index: {}]   ;;  %s288_s1 = inlined_call_operand.hbm [shape: f32[8,128], index: 1, kind: input, shape index: {}]   ;;  %s289_s2 = inlined_call_operand.hbm [shape: f32[8,128], index: 2, kind: input, shape index: {}]   ;;  %s290_s3 = inlined_call_operand.hbm [shape: f32[1,128], index: 3, kind: output, shape index: {}]  }
   0x1   :  { %9 = vsyncpa [#allocation6], 0  ;;  %s27_s14 = sshll.u32 %s288_s1, 4  ;;  %s28_s14 = int_to_ptr.hbm [resolvable:$true] %s27_s14 }
   0x2   :  { %10 = vsyncpa [#allocation4], 0  ;;  %s250_s15 = smov [#allocation5]   ;;  %s16_s19 = sshll.u32 %s287_s0, 4  ;;  %s17_s19 = int_to_ptr.hbm [resolvable:$true] %s16_s19 }
   0x3   :  { %s29_s16 = sshll.u32 %s250_s15, 4  ;;  %s251_s20 = smov [#allocation2]   ;;  %s30_s16 = int_to_ptr.vmem [resolvable:$true] %s29_s16 }
   0x4   :  { %32 = dma.hbm_to_vmem [thread:$0]  %s28_s14, 128, %s30_s16, [#allocation6]  }
   0x5   :  { %s18_s21 = sshll.u32 %s251_s20, 4  ;;  %s38_s24 = sshll.u32 %s289_s2, 4  ;;  %s19_s21 = int_to_ptr.vmem [resolvable:$true] %s18_s21  ;;  %s39_s24 = int_to_ptr.hbm [resolvable:$true] %s38_s24 }
   0x6   :  { %21 = dma.hbm_to_vmem [thread:$0]  %s17_s19, 128, %s19_s21, [#allocation3]  }
   0x7   :  { %s252_s1 = smov [#allocation7]  }
   0x8   :  { %s40_s25 = sshll.u32 %s252_s1, 4  ;;  %s41_s25 = int_to_ptr.vmem [resolvable:$true] %s40_s25 }
   0x9   :  { %43 = dma.hbm_to_vmem [thread:$0]  %s39_s24, 128, %s41_s25, [#allocation6]  }
   0xa   :  { %244 = dma.done.wait [#allocation3], 128  }
   0xb   :  { %245 = vsyncadd [#allocation3], 4294967168 }
   0xc   :  { %246 = dma.done.wait [#allocation6], 256  }
   0xd   :  { %247 = vsyncadd [#allocation6], 4294967040  ;;  %v253_v0 = vmov 0.0   ;;  %v63_v1 = vld [vmem:[#allocation7] sm:$0xff]  ;;  %v61_v2 = vld [vmem:[#allocation2] sm:$0xff]  ;;  %v99_v32 = vlaneseq  ;;  %s254_s27 = smov [#allocation8]  }
   0xe   :  { %60 = vst [vmem:[#allocation8] sm:$0x1] %v253_v0  ;;  %v62_v3 = vld [vmem:[#allocation5] sm:$0xff]  ;;  %71 = vadd.xlane.f32.xlu0 %v63_v1  ;;  %144 = vlog2.f32 %v61_v2  ;;  %vm69_vm0 = vcmp.gt.f32.partialorder %v63_v1, 0.0  ;;  %s120_s28 = sshll.u32 %s254_s27, 4  ;;  %s122_s4 = sshll.u32 %s290_s3, 4  ;;  %s121_s28 = int_to_ptr.vmem [resolvable:$true] %s120_s28  ;;  %s123_s4 = int_to_ptr.hbm [resolvable:$true] %s122_s4 }
   0xf   :  { %146 = vlog2.f32 %v62_v3  ;;  %v100_v33 = vand.u32 127, %v99_v32 }
  0x11   :  { %vm101_vm1 = vcmp.eq.s32.totalorder %v100_v33, 0  ;;  %vm104_vm2 = vcmp.eq.s32.totalorder %v100_v33, 1  ;;  %vm108_vm3 = vcmp.eq.s32.totalorder %v100_v33, 2 }
  0x14   :  { %v145_v4 = vpop.eup %144 }
  0x15   :  { %v147_v5 = vpop.eup %146  ;;  %v65_v6 = vmul.f32 0.6931472, %v145_v4  ;;  %v112_v41 = vld [vmem:[#allocation8] sm:$0x1] }
  0x16   :  { %v67_v7 = vmul.f32 0.6931472, %v147_v5 }
  0x18   :  { %v68_v8 = vsub.f32 %v65_v6, %v67_v7 }
  0x1a   :  { %v70_v9 = vsel %vm69_vm0, %v68_v8, 0.0 }
  0x1b   :  { %80 = vadd.xlane.f32.xlu0 %v70_v9  ;;  %v89_v10 = vmul.f32 %v70_v9, %v70_v9 }
  0x1d   :  { %90 = vadd.xlane.f32.xlu1 %v89_v10 }
  0x81   :  { %v72_v11 = vpop.xlane.xlu0 %71 }
  0x82   :  { %v73_v12 = vrot.slane %v72_v11, 4 }
  0x84   :  { %v74_v13 = vadd.f32 %v73_v12, %v72_v11 }
  0x86   :  { %v75_v14 = vrot.slane %v74_v13, 2 }
  0x88   :  { %v76_v15 = vadd.f32 %v75_v14, %v74_v13 }
  0x8a   :  { %v77_v16 = vrot.slane %v76_v15, 1 }
  0x8c   :  { %v78_v17 = vadd.f32 %v77_v16, %v76_v15 }
  0x8e   :  { %v81_v18 = vpop.xlane.xlu0 %80  ;;  %133 = vpush %v78_v17 }
  0x8f   :  { %v82_v19 = vrot.slane %v81_v18, 4 }
  0x90   :  { %v91_v20 = vpop.xlane.xlu1 %90 }
  0x91   :  { %v83_v21 = vadd.f32 %v82_v19, %v81_v18  ;;  %v92_v22 = vrot.slane %v91_v20, 4 }
  0x93   :  { %v84_v23 = vrot.slane %v83_v21, 2  ;;  %v93_v24 = vadd.f32 %v92_v22, %v91_v20 }
  0x95   :  { %v85_v25 = vadd.f32 %v84_v23, %v83_v21  ;;  %v94_v26 = vrot.slane %v93_v24, 2 }
  0x97   :  { %v95_v27 = vadd.f32 %v94_v26, %v93_v24  ;;  %v86_v28 = vrot.slane %v85_v25, 1 }
  0x99   :  { %v87_v29 = vadd.f32 %v86_v28, %v85_v25  ;;  %v96_v30 = vrot.slane %v95_v27, 1 }
  0x9b   :  { %135 = vpush %v87_v29  ;;  %v97_v31 = vadd.f32 %v96_v30, %v95_v27 }
  0x9d   :  { %137 = vpush %v97_v31 }
  0xbf   :  { %s134_s0 = spop %133 }
  0xc0   :  { %v102_v34 = vstv %s134_s0 }
  0xc1   :  { %v103_v36 = vsel %vm101_vm1, %v102_v34, 0.0 }
  0xcc   :  { %s136_s2 = spop %135 }
  0xcd   :  { %v105_v35 = vstv %s136_s2 }
  0xce   :  { %v106_v37 = vsel %vm104_vm2, %v105_v35, 0.0  ;;  %s138_s26 = spop %137 }
  0xcf   :  { %v107_v38 = vadd.f32 %v106_v37, %v103_v36  ;;  %v109_v39 = vstv %s138_s26 }
  0xd0   :  { %v110_v40 = vsel %vm108_vm3, %v109_v39, 0.0 }
  0xd1   :  { %v111_v42 = vadd.f32 %v110_v40, %v107_v38 }
  0xd3   :  { %v113_v43 = vadd.f32 %v112_v41, %v111_v42 }
  0xd5   :  { %114 = vst [vmem:[#allocation8] sm:$0x1] %v113_v43 }
  0xd6   :  { %125 = dma.vmem_to_hbm [thread:$0]  %s121_s28, 16, %s123_s4, [#allocation4]  }
  0xd7   :  { %248 = dma.done.wait [#allocation4], 16  }
  0xd8   :  { %249 = vsyncadd [#allocation4], 4294967280 }
  0xd9   :  { %130 = vsyncpa [#allocation3], 1 }
  0xda   :  { %131 = vsyncpa [#allocation6], 1 }
  0xdb   :  { %132 = vsyncpa [#allocation4], 1 }

</bundles_post_ra>
